<compile_context>
chip_gen: v5e
topology: v5e:2x2
jax: 0.10.0
libtpu: 0.0.40
codegen_flags: <defaults>
</compile_context>

<pallas_src>
import jax
import jax.numpy as jnp
from jax import lax
from jax.experimental import pallas as pl
from jax.experimental.pallas import tpu as pltpu


def sysnet_kernel(x_ref, w1t_ref, b1t_ref, w2t_ref, b2t_ref, w3c_ref,
                  b3_ref, out_ref):
    # x arrives in its natural [Bt, F] layout (no wrapper transpose / pad).
    x = x_ref[...]                                                # [Bt, F] f32
    xb = x.astype(w1t_ref.dtype)                                  # MXU dtype (bf16 by default)

    # Linear1 (BatchNorm folded in): contract the lane axes of both operands,
    # i.e. W1^T @ x^T -> [2F, Bt]; the needed transpose goes to the XLU slot.
    h = lax.dot_general(w1t_ref[...], xb, (((1,), (1,)), ((), ())),
                        preferred_element_type=jnp.float32) + b1t_ref[...]
    h = jnp.maximum(h, 0.1 * h)                                   # LeakyReLU(0.1), f32 VPU

    # Linear2 -> [F+5, Bt]
    h = jnp.dot(w2t_ref[...], h.astype(w2t_ref.dtype),
                preferred_element_type=jnp.float32) + b2t_ref[...]
    h = jnp.maximum(h, 0.1 * h)

    # Linear3 (F+5 -> 1): VPU multiply + sublane reduce (avoid N=1 MXU matmul).
    # Output stays lane-dense: [1, Bt].  b3 already includes self.bias.
    out_ref[...] = jnp.sum(h * w3c_ref[...], axis=0, keepdims=True) + b3_ref[0]


def sys_network_forward(x, params, bias=0.0, *, block_b=16384,
                        mxu_dtype=jnp.bfloat16):
    """Full SysNetwork forward pass.

    block_b:   cap on the batch-tile (lane) size; tiles are 64*bt bytes so
               even 16K-32K is cheap, but <=16K keeps a wide margin on
               v7x's 64 MiB VMEM.
    mxu_dtype: dtype of the MXU operands (bf16 default; f32 for validation).
    """
    B, F = x.shape
    gamma, beta, w1, b1, w2, b2, w3, b3 = params
    h0 = w1.shape[1]          # 2F
    h1 = w2.shape[1]          # F + 5

    xf = x.astype(jnp.float32)

    # ---- BatchNorm1d training-mode statistics in ONE pass over x ----------
    # sum and sum-of-squares are sibling reductions over the same operand, so
    # under jit XLA fuses them into a single read of x (no second stats pass).
    n = jnp.float32(B)
    s1 = jnp.sum(xf, axis=0, keepdims=True)                       # [1, F]
    s2 = jnp.sum(xf * xf, axis=0, keepdims=True)                  # [1, F]
    mean = s1 / n
    var = jnp.maximum(s2 / n - mean * mean, 0.0)                  # biased var
    scale = gamma * lax.rsqrt(var + 1e-5)                         # [1, F]
    shift = beta - mean * scale                                   # [1, F]
    # Fold BN scale/shift into Linear1 (keeps full-batch semantics despite
    # batch-tiling inside the kernel).
    w1_eff = w1 * scale.reshape(F, 1)                             # [F, 2F]
    b1_eff = b1 + shift @ w1                                      # [1, 2F]

    # ---- transposed weights (features on sublanes, batch on lanes) --------
    w1t = w1_eff.T.astype(mxu_dtype)                              # [2F, F]
    b1t = b1_eff.T.astype(jnp.float32)                            # [2F, 1]
    w2t = w2.T.astype(mxu_dtype)                                  # [F+5, 2F]
    b2t = b2.T.astype(jnp.float32)                                # [F+5, 1]
    w3c = w3.astype(jnp.float32)                                  # [F+5, 1]
    b3s = (b3.reshape(-1)[:1] + bias).astype(jnp.float32)         # [1] scalar

    # ---- batch tiling: 128-multiple, >=2 grid steps when possible ---------
    cap = max(128, (int(block_b) // 128) * 128)
    bt = min(cap, max(128, pl.cdiv(pl.cdiv(B, 2), 128) * 128))
    grid = (pl.cdiv(B, bt),)      # ragged last block handled by Pallas

    def full(shape):
        # constant index_map -> same block every step -> DMA'd once, resident
        return pl.BlockSpec(shape, lambda i: (0, 0))

    out = pl.pallas_call(
        sysnet_kernel,
        out_shape=jax.ShapeDtypeStruct((1, B), jnp.float32),
        grid=grid,
        in_specs=[
            pl.BlockSpec((bt, F), lambda i: (i, 0)),              # x tile (pipelined)
            full((h0, F)),                                        # W1^T (BN folded)
            full((h0, 1)),                                        # b1^T
            full((h1, h0)),                                       # W2^T
            full((h1, 1)),                                        # b2^T
            full((h1, 1)),                                        # w3 column
            pl.BlockSpec(memory_space=pltpu.MemorySpace.SMEM),    # b3 + self.bias
        ],
        out_specs=pl.BlockSpec((1, bt), lambda i: (0, i)),        # lane-dense output
        compiler_params=pltpu.CompilerParams(
            dimension_semantics=("parallel",),                    # megacore on v7x
            vmem_limit_bytes=32 * 1024 * 1024,                    # safe on v5e/v6e/v7x
        ),
    )(xf, w1t, b1t, w2t, b2t, w3c, b3s)

    # [1, B] row-major == B contiguous values -> free reshape, no transpose.
    return out.reshape(B, 1)


def make_params(key, n_var_flat):
    """Deterministic parameter init mirroring PyTorch default inits."""
    h0 = 2 * n_var_flat          # hidden_layers[0]
    h1 = n_var_flat + 5          # hidden_layers[1]
    out_dim = 1                  # args.quadratic assumed False

    ks = jax.random.split(key, 6)

    def linear_init(kw, kb, fan_in, fan_out):
        bound = 1.0 / jnp.sqrt(jnp.float32(fan_in))
        w = jax.random.uniform(kw, (fan_in, fan_out), jnp.float32, -bound, bound)
        b = jax.random.uniform(kb, (1, fan_out), jnp.float32, -bound, bound)
        return w, b

    gamma = jnp.ones((1, n_var_flat), jnp.float32)   # BatchNorm1d weight
    beta = jnp.zeros((1, n_var_flat), jnp.float32)   # BatchNorm1d bias
    w1, b1 = linear_init(ks[0], ks[1], n_var_flat, h0)
    w2, b2 = linear_init(ks[2], ks[3], h0, h1)
    w3, b3 = linear_init(ks[4], ks[5], h1, out_dim)
    return (gamma, beta, w1, b1, w2, b2, w3, b3)


def reference_forward(x, params, bias=0.0):
    """Pure-JAX f32 reference (normalize-then-matmul, two-pass variance)."""
    gamma, beta, w1, b1, w2, b2, w3, b3 = params
    mean = jnp.mean(x, axis=0, keepdims=True)
    var = jnp.mean((x - mean) ** 2, axis=0, keepdims=True)
    h = (x - mean) / jnp.sqrt(var + 1e-5) * gamma + beta
    h = h @ w1 + b1
    h = jnp.where(h >= 0, h, 0.1 * h)
    h = h @ w2 + b2
    h = jnp.where(h >= 0, h, 0.1 * h)
    h = h @ w3 + b3
    return bias + h


if __name__ == "__main__":
    n_var_flat = 16
    batch = 500          # not a multiple of 128 -> exercises ragged last block

    key = jax.random.PRNGKey(0)
    kx, kp = jax.random.split(key)
    x = jax.random.normal(kx, (batch, n_var_flat), dtype=jnp.float32)
    params = make_params(kp, n_var_flat)
    bias = 0.25          # set via set_bias() in the original module

    fwd = jax.jit(sys_network_forward, static_argnames=("block_b", "mxu_dtype"))
    ref = reference_forward(x, params, bias)

    # 1) f32 MXU path with a small tile: grid=(4,), ragged last block; tight check.
    out32 = jax.block_until_ready(
        fwd(x, params, bias, block_b=128, mxu_dtype=jnp.float32))
    assert out32.shape == (batch, 1)
    assert jnp.allclose(out32, ref, atol=2e-4, rtol=2e-4), \
        float(jnp.max(jnp.abs(out32 - ref)))

    # 2) default perf config: bf16 MXU operands, auto tile (bt=256 -> grid=(2,)).
    out = jax.block_until_ready(fwd(x, params, bias))
    assert out.shape == (batch, 1)
    assert jnp.allclose(out, ref, atol=5e-2, rtol=5e-2), \
        float(jnp.max(jnp.abs(out - ref)))

    print("KERNEL_OK")
</pallas_src>

<mosaic_0001>
module attributes {stable_mosaic.version = 11 : i64} {
  func.func @sysnet_kernel(%arg0: i32, %arg1: memref<128x16xf32, #tpu.memory_space<vmem>>, %arg2: memref<32x16xf32, #tpu.memory_space<vmem>>, %arg3: memref<32x1xf32, #tpu.memory_space<vmem>>, %arg4: memref<21x32xf32, #tpu.memory_space<vmem>>, %arg5: memref<21x1xf32, #tpu.memory_space<vmem>>, %arg6: memref<21x1xf32, #tpu.memory_space<vmem>>, %arg7: memref<1xf32, #tpu.memory_space<smem>>, %arg8: memref<1x128xf32, #tpu.memory_space<vmem>>) attributes {dimension_semantics = [#tpu.dimension_semantics<parallel>], iteration_bounds = array<i64: 4>, scalar_prefetch = 0 : i64, scratch_operands = 0 : i64, tpu.core_type = #tpu.core_type<tc>, window_params = [{transform_indices = @transform_0, window_bounds = array<i64: 128, 16>}, {pipeline_mode = #tpu.pipeline_mode<synchronous>, transform_indices = @transform_1, window_bounds = array<i64: 32, 16>}, {pipeline_mode = #tpu.pipeline_mode<synchronous>, transform_indices = @transform_2, window_bounds = array<i64: 32, 1>}, {pipeline_mode = #tpu.pipeline_mode<synchronous>, transform_indices = @transform_3, window_bounds = array<i64: 21, 32>}, {pipeline_mode = #tpu.pipeline_mode<synchronous>, transform_indices = @transform_4, window_bounds = array<i64: 21, 1>}, {pipeline_mode = #tpu.pipeline_mode<synchronous>, transform_indices = @transform_5, window_bounds = array<i64: 21, 1>}, {transform_indices = @transform_6, window_bounds = array<i64: 1>}, {transform_indices = @transform_7, window_bounds = array<i64: 1, 128>}]} {
    %c0 = arith.constant 0 : index
    %c0_0 = arith.constant 0 : index
    %0 = vector.load %arg1[%c0, %c0_0] : memref<128x16xf32, #tpu.memory_space<vmem>>, vector<128x16xf32>
    %c0_1 = arith.constant 0 : index
    %c0_2 = arith.constant 0 : index
    %1 = vector.load %arg2[%c0_1, %c0_2] : memref<32x16xf32, #tpu.memory_space<vmem>>, vector<32x16xf32>
    %cst = arith.constant dense<0.000000e+00> : vector<32x128xf32>
    %2 = tpu.matmul %1, %0, %cst {dimension_numbers = #tpu.dot_dimension_numbers<[1], [1], [0], [0], [0, 0, 1, 0], [], []>} : vector<32x16xf32>, vector<128x16xf32>, vector<32x128xf32> -> vector<32x128xf32>
    %c0_3 = arith.constant 0 : index
    %c0_4 = arith.constant 0 : index
    %3 = vector.load %arg3[%c0_3, %c0_4] : memref<32x1xf32, #tpu.memory_space<vmem>>, vector<32x1xf32>
    %4 = vector.broadcast %3 : vector<32x1xf32> to vector<32x128xf32>
    %5 = arith.addf %2, %4 : vector<32x128xf32>
    %cst_5 = arith.constant 1.000000e-01 : f32
    %6 = vector.broadcast %cst_5 : f32 to vector<32x128xf32>
    %7 = arith.mulf %6, %5 : vector<32x128xf32>
    %8 = arith.maximumf %5, %7 : vector<32x128xf32>
    %c0_6 = arith.constant 0 : index
    %c0_7 = arith.constant 0 : index
    %9 = vector.load %arg4[%c0_6, %c0_7] : memref<21x32xf32, #tpu.memory_space<vmem>>, vector<21x32xf32>
    %cst_8 = arith.constant dense<0.000000e+00> : vector<21x128xf32>
    %10 = tpu.matmul %9, %8, %cst_8 {dimension_numbers = #tpu.dot_dimension_numbers<[1], [0], [0], [1], [0, 0, 1, 1], [], []>} : vector<21x32xf32>, vector<32x128xf32>, vector<21x128xf32> -> vector<21x128xf32>
    %c0_9 = arith.constant 0 : index
    %c0_10 = arith.constant 0 : index
    %11 = vector.load %arg5[%c0_9, %c0_10] : memref<21x1xf32, #tpu.memory_space<vmem>>, vector<21x1xf32>
    %12 = vector.broadcast %11 : vector<21x1xf32> to vector<21x128xf32>
    %13 = arith.addf %10, %12 : vector<21x128xf32>
    %cst_11 = arith.constant 1.000000e-01 : f32
    %14 = vector.broadcast %cst_11 : f32 to vector<21x128xf32>
    %15 = arith.mulf %14, %13 : vector<21x128xf32>
    %16 = arith.maximumf %13, %15 : vector<21x128xf32>
    %c0_12 = arith.constant 0 : index
    %c0_13 = arith.constant 0 : index
    %17 = vector.load %arg6[%c0_12, %c0_13] : memref<21x1xf32, #tpu.memory_space<vmem>>, vector<21x1xf32>
    %18 = vector.broadcast %17 : vector<21x1xf32> to vector<21x128xf32>
    %19 = arith.mulf %16, %18 : vector<21x128xf32>
    %cst_14 = arith.constant dense<0.000000e+00> : vector<128xf32>
    %20 = vector.multi_reduction <add>, %19, %cst_14 [0] : vector<21x128xf32> to vector<128xf32>
    %21 = vector.shape_cast %20 : vector<128xf32> to vector<1x128xf32>
    %c0_15 = arith.constant 0 : index
    %22 = memref.load %arg7[%c0_15] : memref<1xf32, #tpu.memory_space<smem>>
    %23 = vector.broadcast %22 : f32 to vector<1x128xf32>
    %24 = arith.addf %21, %23 : vector<1x128xf32>
    %c0_16 = arith.constant 0 : index
    %c0_17 = arith.constant 0 : index
    %25 = vector.load %arg8[%c0_16, %c0_17] : memref<1x128xf32, #tpu.memory_space<vmem>>, vector<1x128xf32>
    tpu.vector_store %arg8[%c0_16, %c0_17], %24 {strides = array<i32>} : memref<1x128xf32, #tpu.memory_space<vmem>>, vector<1x128xf32>,
    return
  }
  func.func @transform_0(%arg0: i32) -> (i32, i32) {
    %c0_i32 = arith.constant 0 : i32
    %c0_i32_0 = arith.constant 0 : i32
    return %arg0, %c0_i32 : i32, i32
  }
  func.func @transform_1(%arg0: i32) -> (i32, i32) {
    %c0_i32 = arith.constant 0 : i32
    %c0_i32_0 = arith.constant 0 : i32
    %c0_i32_1 = arith.constant 0 : i32
    return %c0_i32, %c0_i32_0 : i32, i32
  }
  func.func @transform_2(%arg0: i32) -> (i32, i32) {
    %c0_i32 = arith.constant 0 : i32
    %c0_i32_0 = arith.constant 0 : i32
    %c0_i32_1 = arith.constant 0 : i32
    return %c0_i32, %c0_i32_0 : i32, i32
  }
  func.func @transform_3(%arg0: i32) -> (i32, i32) {
    %c0_i32 = arith.constant 0 : i32
    %c0_i32_0 = arith.constant 0 : i32
    %c0_i32_1 = arith.constant 0 : i32
    return %c0_i32, %c0_i32_0 : i32, i32
  }
  func.func @transform_4(%arg0: i32) -> (i32, i32) {
    %c0_i32 = arith.constant 0 : i32
    %c0_i32_0 = arith.constant 0 : i32
    %c0_i32_1 = arith.constant 0 : i32
    return %c0_i32, %c0_i32_0 : i32, i32
  }
  func.func @transform_5(%arg0: i32) -> (i32, i32) {
    %c0_i32 = arith.constant 0 : i32
    %c0_i32_0 = arith.constant 0 : i32
    %c0_i32_1 = arith.constant 0 : i32
    return %c0_i32, %c0_i32_0 : i32, i32
  }
  func.func @transform_6(%arg0: i32) -> i32 {
    %c0_i32 = arith.constant 0 : i32
    %c0_i32_0 = arith.constant 0 : i32
    return %c0_i32 : i32
  }
  func.func @transform_7(%arg0: i32) -> (i32, i32) {
    %c0_i32 = arith.constant 0 : i32
    %c0_i32_0 = arith.constant 0 : i32
    return %c0_i32, %arg0 : i32, i32
  }
}

</mosaic_0001>

<bundles_post_ra>
// kernel: sys_network_forward.1
= control target key start
LH: loop header
LB: loop body
LE: loop exit
PB: predicated region body
PF: predicated region fallthrough
CT: control target
= control target key end

     0   :  { %s1026_s0 = inlined_call_operand.vmem [shape: f32[500,16], index: 0, kind: input, shape index: {}]   ;;  %s1027_s1 = inlined_call_operand.vmem [shape: f32[32,16], index: 1, kind: input, shape index: {}]   ;;  %s1028_s2 = inlined_call_operand.vmem [shape: f32[32,1], index: 2, kind: input, shape index: {}]   ;;  %s1029_s3 = inlined_call_operand.vmem [shape: f32[21,32], index: 3, kind: input, shape index: {}]   ;;  %s1030_s4 = inlined_call_operand.vmem [shape: f32[21,1], index: 4, kind: input, shape index: {}]   ;;  %s1031_s5 = inlined_call_operand.vmem [shape: f32[21,1], index: 5, kind: input, shape index: {}]   ;;  %s1032_s6 = inlined_call_operand.<no memory space> [shape: f32[1], index: 6, kind: input, shape index: {}]   ;;  %s1033_s7 = inlined_call_operand.hbm [shape: f32[1,500], index: 7, kind: output, shape index: {}]  }
   0x1   :  { %12 = sst [smem:[#allocation2]] %s1032_s6 }
   0x2   :  { %13 = vsyncpa [#allocation4], 0 }
   0x3   :  { %15 = vsyncpa [#allocation4 + $0x1], 0  ;;  %s821_s26 = smov 0   ;;  %s823_s27 = smov 0  }
   0x4   :  { %s825_s28 = smov 0   ;;  %s827_s29 = smov 0  }
   0x5 LB: > { %s842_s6 = sadd.s32 4294967295, %s775_s29   ;;  %s607_s30 = sadd.s32 4294967294, %s775_s29   ;;  %s775_s29 = sphi %s827_s29, %s1039_s29   ;;  %s771_s28 = sphi %s825_s28, %s1038_s28   ;;  %s767_s27 = sphi %s823_s27, %s1037_s27   ;;  %s763_s26 = sphi %s821_s26, %s1036_s26  }
   0x6   : > { %s846_s8 = sadd.s32 1, %s775_s29   ;;  %s180_s9 = sadd.s32 1, %s771_s28 }
   0x7   : > { %s177_s10 = ssub.s32 %s775_s29, %s846_s8  ;;  %p190_p0 = scmp.ne.s32.totalorder %s771_s28, %s767_s27 }
   0x8   : > { %p178_p1 = scmp.eq.s32.totalorder %s177_s10, 0  ;;  %p191_p2 = scmp.eq.s32.totalorder %s842_s6, 3 }
   0x9   : > { %p196_p3 = scmp.ne.s32.totalorder %s767_s27, %s763_s26  ;;  %p197_p4 = scmp.eq.s32.totalorder %s607_s30, 3 }
   0xa   : > { %s857_s11 = scalar_select %p178_p1, %s771_s28, %s180_s9  }
   0xb   : > { %p859_p5 = por %p191_p2, %p190_p0  ;;  %p863_p6 = por %p197_p4, %p196_p3 }
   0xc   : > { %p610_p7 = scmp.ge.s32.totalorder %s775_s29, 1  ;;  %p250_p8 = scmp.lt.s32.totalorder %s775_s29, 5 }
   0xe   : > { %p251_p9 = pnand %p610_p7, %p250_p8 }
   0xf   : > { %s611_s14 = sshll.u32 (!%p251_p9), %s842_s6, 4  ;;  %s535_s24 = sld [smem:[#allocation2]] (!%p251_p9) }
  0x10   : > { %254 = sbr.rel (%p251_p9) target bundleno = 411 (0x19b), region = 48  ;;  %p290_p10 = scmp.lt.s32.totalorder (!%p251_p9), %s611_s14, 62 }
  0x11   : > { %s548_s9 = scalar_lea.hbm (!%p251_p9), %s1033_s7, %s842_s6  ;;  %s733_s21 = scalar_lea.hbm (!%p251_p9), %s1033_s7, 4 }
  0x15   : > { %s1041_s14 = smov (!%p290_p10, %s611_s14), 62  ;;  %vm343_vm0 = vcmask 130048   ;;  %v322_v7 = vld [vmem:[%s1028_s2 + $0x18] sm:$0xff]  ;;  %v777_v9 = vmov 0   ;;  %v321_v11 = vld [vmem:[%s1028_s2 + $0x10] sm:$0xff]  ;;  %v320_v12 = vld [vmem:[%s1028_s2 + $0x8] sm:$0xff] }
  0x16   : > { %s612_s15 = sshll.u32 %s1041_s14, 3  ;;  %710 = vset.pattern.permute.xlu0 %v777_v9  ;;  %711 = vset.pattern.permute.xlu1 %v777_v9  ;;  %v446_v15 = vld [vmem:[%s1030_s4 + $0x10] sm:$0x1f]  ;;  %v319_v16 = vld [vmem:[%s1028_s2] sm:$0xff]  ;;  %v316_v25 = vld [vmem:[%s1027_s1 + $0x8] sm:$0xff]  ;;  %vm462_vm1 = vcmask 261120  }
  0x17   : > { %s873_s18 = scalar_lea.vmem %s1026_s0, %s612_s15  ;;  %340 = vperm.xlu0 %710, %v322_v7   ;;  %712 = vset.pattern.permute.xlu2 %v777_v9  ;;  %v504_v19 = vld [vmem:[%s1031_s5] sm:$0xff]  ;;  %v506_v20 = vld [vmem:[%s1031_s5 + $0x10] sm:$0x1f]  ;;  %v318_v27 = vld [vmem:[%s1027_s1 + $0x18] sm:$0xff]  ;;  %vm526_vm2 = vcmask 1044480   ;;  %s552_s15 = sshll.u32 %s548_s9, 4  ;;  %s553_s15 = int_to_ptr.hbm [resolvable:$true] %s552_s15 }
  0x18   : > { %v314_v0 = vld [vmem:[%s873_s18 + $0x78] sm:$0xff]  ;;  %v313_v1 = vld [vmem:[%s873_s18 + $0x70] sm:$0xff]  ;;  %v312_v2 = vld [vmem:[%s873_s18 + $0x68] sm:$0xff]  ;;  %330 = vperm.xlu1 %711, %v320_v12   ;;  %s727_s17 = sshra.s32 %s553_s15, 4  ;;  %s728_s17 = int_to_ptr.hbm [resolvable:$true] %s727_s17 }
  0x19   : > { %639 = vmatpush.xpose.msk.msra.mxu3 %vm343_vm0, %v314_v0  ;;  %638 = vmatpush.xpose.msk.msra.mxu2 %vm343_vm0, %v314_v0  ;;  %v311_v3 = vld [vmem:[%s873_s18 + $0x60] sm:$0xff]  ;;  %v310_v4 = vld [vmem:[%s873_s18 + $0x58] sm:$0xff]  ;;  %v309_v5 = vld [vmem:[%s873_s18 + $0x50] sm:$0xff]  ;;  %s729_s19 = scalar_lea.hbm %s728_s17, 1  ;;  %p734_p0 = scmp.lt.s32.totalorder %s728_s17, %s1033_s7 }
  0x1a   : > { %613 = vmatpush.xpose.msk.msra.mxu0 %vm343_vm0, %v314_v0  ;;  %v308_v6 = vld [vmem:[%s873_s18 + $0x48] sm:$0xff]  ;;  %v307_v8 = vld [vmem:[%s873_s18 + $0x40] sm:$0xff]  ;;  %v306_v10 = vld [vmem:[%s873_s18 + $0x38] sm:$0xff]  ;;  %p730_p11 = scmp.ne.s32.totalorder %s728_s17, %s729_s19  ;;  %p735_p1 = scmp.lt.s32.totalorder %s733_s21, %s729_s19 }
  0x1b   : > { %v305_v13 = vld [vmem:[%s873_s18 + $0x30] sm:$0xff]  ;;  %v304_v14 = vld [vmem:[%s873_s18 + $0x28] sm:$0xff]  ;;  %v303_v17 = vld [vmem:[%s873_s18 + $0x20] sm:$0xff] }
  0x1c   : > { %v302_v18 = vld [vmem:[%s873_s18 + $0x18] sm:$0xff]  ;;  %v301_v21 = vld [vmem:[%s873_s18 + $0x10] sm:$0xff]  ;;  %v300_v22 = vld [vmem:[%s873_s18 + $0x8] sm:$0xff]  ;;  %p731_p12 = pnand %p730_p11, %p859_p5  ;;  %p736_p2 = por %p735_p1, %p734_p0 }
  0x1d   : > { %641 = vmatpush.xpose.msk.msra.mxu3 %vm343_vm0, %v313_v1  ;;  %640 = vmatpush.xpose.msk.msra.mxu2 %vm343_vm0, %v313_v1  ;;  %v299_v23 = vld [vmem:[%s873_s18] sm:$0xff]  ;;  %v317_v24 = vld [vmem:[%s1027_s1 + $0x10] sm:$0xff]  ;;  %v445_v43 = vld [vmem:[%s1030_s4 + $0x8] sm:$0xff]  ;;  %s283_s18 = sand.u32 1, %s767_s27  }
  0x1e   : > { %614 = vmatpush.xpose.msk.msra.mxu0 %vm343_vm0, %v313_v1  ;;  %v315_v26 = vld [vmem:[%s1027_s1] sm:$0xff]  ;;  %v505_v51 = vld [vmem:[%s1031_s5 + $0x8] sm:$0xff]  ;;  %v443_v53 = vld [vmem:[%s1029_s3 + $0x10] sm:$0x1f]  ;;  %s284_s10 = scalar_lea.vmem [#allocation3], %s283_s18  ;;  %s540_s16 = scalar_lea.sflag [#allocation4], %s283_s18 }
  0x1f   : > { %335 = vperm.xlu0 %710, %v321_v11   ;;  %v444_v33 = vld [vmem:[%s1030_s4] sm:$0xff]  ;;  %v442_v52 = vld [vmem:[%s1029_s3 + $0x8] sm:$0xff]  ;;  %s550_s14 = sshll.u32 %s284_s10, 4  ;;  %p732_p13 = pneg %p731_p12  ;;  %s551_s14 = int_to_ptr.vmem [resolvable:$true] %s550_s14 }
  0x20   : > { %325 = vperm.xlu1 %711, %v319_v16   ;;  %449 = vperm.xlu2 %712, %v444_v33   ;;  %v441_v50 = vld [vmem:[%s1029_s3] sm:$0xff] }
  0x21   : > { %643 = vmatpush.xpose.msk.msra.mxu3 %vm343_vm0, %v312_v2  ;;  %642 = vmatpush.xpose.msk.msra.mxu2 %vm343_vm0, %v312_v2  ;;  %p737_p3 = pnand %p736_p2, %p732_p13 }
  0x22   : > { %615 = vmatpush.xpose.msk.msra.mxu0 %vm343_vm0, %v312_v2 }
  0x25   : > { %645 = vmatpush.xpose.msk.msra.mxu3 %vm343_vm0, %v311_v3  ;;  %644 = vmatpush.xpose.msk.msra.mxu2 %vm343_vm0, %v311_v3 }
  0x26   : > { %616 = vmatpush.xpose.msk.msra.mxu0 %vm343_vm0, %v311_v3 }
  0x27   : > { %459 = vperm.xlu0 %710, %v446_v15  }
  0x28   : > { %509 = vperm.xlu1 %711, %v504_v19   ;;  %454 = vperm.xlu2 %712, %v445_v43   ;;  %v536_v19 = vstv %s535_s24 }
  0x29   : > { %647 = vmatpush.xpose.msk.msra.mxu3 %vm343_vm0, %v310_v4  ;;  %646 = vmatpush.xpose.msk.msra.mxu2 %vm343_vm0, %v310_v4 }
  0x2a   : > { %617 = vmatpush.xpose.msk.msra.mxu0 %vm343_vm0, %v310_v4 }
  0x2d   : > { %649 = vmatpush.xpose.msk.msra.mxu3 %vm343_vm0, %v309_v5  ;;  %648 = vmatpush.xpose.msk.msra.mxu2 %vm343_vm0, %v309_v5 }
  0x2e   : > { %618 = vmatpush.xpose.msk.msra.mxu0 %vm343_vm0, %v309_v5 }
  0x2f   : > { %519 = vperm.xlu0 %710, %v506_v20  }
  0x30   : > { %514 = vperm.xlu2 %712, %v505_v51  }
  0x31   : > { %651 = vmatpush.xpose.msk.msra.mxu3 %vm343_vm0, %v308_v6  ;;  %650 = vmatpush.xpose.msk.msra.mxu2 %vm343_vm0, %v308_v6 }
  0x32   : > { %619 = vmatpush.xpose.msk.msra.mxu0 %vm343_vm0, %v308_v6 }
  0x35   : > { %653 = vmatpush.xpose.msk.msra.mxu3 %vm343_vm0, %v307_v8  ;;  %652 = vmatpush.xpose.msk.msra.mxu2 %vm343_vm0, %v307_v8 }
  0x36   : > { %620 = vmatpush.xpose.msk.msra.mxu0 %vm343_vm0, %v307_v8 }
  0x39   : > { %655 = vmatpush.xpose.msk.msra.mxu3 %vm343_vm0, %v306_v10  ;;  %654 = vmatpush.xpose.msk.msra.mxu2 %vm343_vm0, %v306_v10 }
  0x3a   : > { %621 = vmatpush.xpose.msk.msra.mxu0 %vm343_vm0, %v306_v10 }
  0x3d   : > { %657 = vmatpush.xpose.msk.msra.mxu3 %vm343_vm0, %v305_v13  ;;  %656 = vmatpush.xpose.msk.msra.mxu2 %vm343_vm0, %v305_v13 }
  0x3e   : > { %622 = vmatpush.xpose.msk.msra.mxu0 %vm343_vm0, %v305_v13 }
  0x41   : > { %659 = vmatpush.xpose.msk.msra.mxu3 %vm343_vm0, %v304_v14  ;;  %658 = vmatpush.xpose.msk.msra.mxu2 %vm343_vm0, %v304_v14 }
  0x42   : > { %623 = vmatpush.xpose.msk.msra.mxu0 %vm343_vm0, %v304_v14 }
  0x45   : > { %661 = vmatpush.xpose.msk.msra.mxu3 %vm343_vm0, %v303_v17  ;;  %660 = vmatpush.xpose.msk.msra.mxu2 %vm343_vm0, %v303_v17 }
  0x46   : > { %624 = vmatpush.xpose.msk.msra.mxu0 %vm343_vm0, %v303_v17 }
  0x49   : > { %663 = vmatpush.xpose.msk.msra.mxu3 %vm343_vm0, %v302_v18  ;;  %662 = vmatpush.xpose.msk.msra.mxu2 %vm343_vm0, %v302_v18 }
  0x4a   : > { %625 = vmatpush.xpose.msk.msra.mxu0 %vm343_vm0, %v302_v18 }
  0x4d   : > { %665 = vmatpush.xpose.msk.msra.mxu3 %vm343_vm0, %v301_v21  ;;  %664 = vmatpush.xpose.msk.msra.mxu2 %vm343_vm0, %v301_v21 }
  0x4e   : > { %626 = vmatpush.xpose.msk.msra.mxu0 %vm343_vm0, %v301_v21 }
  0x51   : > { %667 = vmatpush.xpose.msk.msra.mxu3 %vm343_vm0, %v300_v22  ;;  %666 = vmatpush.xpose.msk.msra.mxu2 %vm343_vm0, %v300_v22 }
  0x52   : > { %627 = vmatpush.xpose.msk.msra.mxu0 %vm343_vm0, %v300_v22 }
  0x55   : > { %669 = vmatpush.xpose.msk.msra.mxu3 %vm343_vm0, %v299_v23  ;;  %668 = vmatpush.xpose.msk.msra.mxu2 %vm343_vm0, %v299_v23 }
  0x56   : > { %628 = vmatpush.xpose.msk.msra.mxu0 %vm343_vm0, %v299_v23 }
  0x58   : > { %631 = vmatmul.msk.f32.vlgmr.msra.gmra.mxu3 %vm343_vm0, %v317_v24  ;;  %630 = vmatmul.msk.f32.vlgmr.msra.gmra.mxu2 %vm343_vm0, %v316_v25 }
  0x59   : > { %629 = vmatmul.msk.f32.vlgmr.msra.gmra.mxu0 %vm343_vm0, %v315_v26 }
  0x60   : > { %632 = vmatmul.msk.f32.gmra.mxu3 %vm343_vm0, %v318_v27 }
  0x7a   : > { %v450_v54 = vpop.permute.xlu2 %449 }
  0x82   : > { %v455_v56 = vpop.permute.xlu2 %454 }
  0x89   : > { %v341_v28 = vpop.permute.xlu0 %340 }
  0x8a   : > { %v331_v29 = vpop.permute.xlu1 %330  ;;  %v515_v3 = vpop.permute.xlu2 %514 }
  0x91   : > { %v336_v31 = vpop.permute.xlu0 %335 }
  0x92   : > { %v326_v39 = vpop.permute.xlu1 %325 }
  0x99   : > { %v460_v60 = vpop.permute.xlu0 %459 }
  0x9a   : > { %v510_v6 = vpop.permute.xlu1 %509 }
  0xa1   : > { %v520_v8 = vpop.permute.xlu0 %519 }
  0xd6   : > { %v421_v35 = vpop.f32.mrf.mxu0 }
  0xd7   : > { %v422_v41 = vadd.f32 %v421_v35, %v326_v39 }
  0xd9   : > { %v433_v46 = vmul.f32 0.1, %v422_v41 }
  0xdb   : > { %v427_v30 = vpop.f32.mrf.mxu3  ;;  %v424_v32 = vpop.f32.mrf.mxu2  ;;  %v437_v49 = vmax.f32 %v422_v41, %v433_v46 }
  0xdc   : > { %v428_v34 = vadd.f32 %v427_v30, %v336_v31  ;;  %v425_v37 = vadd.f32 %v424_v32, %v331_v29 }
  0xde   : > { %v435_v40 = vmul.f32 0.1, %v428_v34  ;;  %v434_v44 = vmul.f32 0.1, %v425_v37 }
  0xe0   : > { %v439_v47 = vmax.f32 %v428_v34, %v435_v40  ;;  %v438_v48 = vmax.f32 %v425_v37, %v434_v44 }
  0xe3   : > { %v430_v36 = vpop.f32.mrf.mxu3 }
  0xe4   : > { %v431_v38 = vadd.f32 %v430_v36, %v341_v28 }
  0xe6   : > { %v436_v42 = vmul.f32 0.1, %v431_v38 }
  0xe8   : > { %v440_v45 = vmax.f32 %v431_v38, %v436_v42 }
  0xea   : > { %484 = vmatpush.msra.mxu1 %v440_v45 }
  0xec   : > { %485 = vmatpush.msra.mxu1 %v439_v47 }
  0xee   : > { %486 = vmatpush.msra.mxu1 %v438_v48 }
  0xf0   : > { %487 = vmatpush.msra.mxu1 %v437_v49 }
  0xf1   : > { %633 = vmatmul.msk.f32.vlgmr.msra.gmra.mxu1 %vm462_vm1, %v441_v50 }
  0xf9   : > { %634 = vmatmul.msk.f32.gmra.mxu1 %vm462_vm1, %v442_v52 }
 0x101   : > { %635 = vmatmul.msk.f32.gmra.mxu1 %vm462_vm1, %v443_v53 }
 0x16e   : > { %v489_v55 = vpop.f32.mrf.mxu1 }
 0x16f   : > { %v490_v59 = vadd.f32 %v489_v55, %v450_v54 }
 0x171   : > { %v498_v62 = vmul.f32 0.1, %v490_v59 }
 0x173   : > { %v501_v2 = vmax.f32 %v490_v59, %v498_v62 }
 0x175   : > { %v522_v9 = vmul.f32 %v510_v6, %v501_v2 }
 0x176   : > { %v492_v57 = vpop.f32.mrf.mxu1 }
 0x177   : > { %v493_v58 = vadd.f32 %v492_v57, %v455_v56 }
 0x179   : > { %v499_v61 = vmul.f32 0.1, %v493_v58 }
 0x17b   : > { %v502_v63 = vmax.f32 %v493_v58, %v499_v61 }
 0x17d   : > { %v523_v5 = vmul.f32 %v515_v3, %v502_v63 }
 0x17e   : > { %v495_v0 = vpop.f32.mrf.mxu1 }
 0x17f   : > { %v496_v1 = vadd.f32 %v495_v0, %v460_v60  ;;  %v525_v11 = vadd.f32 %v523_v5, %v522_v9 }
 0x181   : > { %v500_v4 = vmul.f32 0.1, %v496_v1 }
 0x183   : > { %v503_v7 = vmax.f32 %v496_v1, %v500_v4 }
 0x185   : > { %v524_v10 = vmul.f32 %v520_v8, %v503_v7 }
 0x187   : > { %v527_v12 = vsel %vm526_vm2, %v524_v10, 0.0 }
 0x188   : > { %v528_v13 = vadd.f32 %v527_v12, %v525_v11 }
 0x18a   : > { %v529_v14 = vrot.slane %v528_v13, 4 }
 0x18c   : > { %v530_v15 = vadd.f32 %v529_v14, %v528_v13 }
 0x18e   : > { %v531_v16 = vrot.slane %v530_v15, 2 }
 0x190   : > { %v532_v17 = vadd.f32 %v531_v16, %v530_v15 }
 0x192   : > { %v533_v18 = vrot.slane %v532_v17, 1 }
 0x194   : > { %v534_v20 = vadd.f32 %v533_v18, %v532_v17 }
 0x196   : > { %v537_v21 = vadd.f32 %v536_v19, %v534_v20 }
 0x198   : > { %538 = vst [vmem:[%s284_s10] sm:$0x1] %v537_v21 }
 0x199   : > { %740 = shalt.err (!%p737_p3)
}
 0x19a   : > { %670 = dma.vmem_to_hbm [thread:$0]  (%p859_p5), %s551_s14, 16, %s553_s15, %s540_s16  }
 0x19b PF: > { %p676_p4 = scmp.ge.s32.totalorder %s775_s29, 2  ;;  %s564_s24 = sand.u32 1, %s763_s26  }
 0x19c   : > { %s565_s18 = scalar_lea.sflag [#allocation4], %s564_s24 }
 0x19d   : > { %p673_p7 = pnand %p676_p4, %p863_p6 }
 0x19f   : > { %p674_p8 = pneg %p673_p7 }
 0x1a1   : > { %758 = dma.done.wait (%p674_p8), %s565_s18, 16  }
 0x1a2   : > { %760 = vsyncadd (%p674_p8), %s565_s18, 4294967280  ;;  %p18_p9 = scmp.ge.s32.totalorder %s846_s8, 6   ;;  %s1036_s26 = smov %s767_s27 }
 0x1a3   : > { %s1037_s27 = smov %s771_s28  ;;  %s1038_s28 = smov %s857_s11 }
 0x1a4   : > { %s1039_s29 = smov %s846_s8  ;;  %20 = sbr.rel (!%p18_p9) target bundleno = 5 (0x5), region = 83 }
 0x1a9   :  { %570 = vsyncpa [#allocation4], 1 }
 0x1aa   :  { %572 = vsyncpa [#allocation4 + $0x1], 1 }

</bundles_post_ra>
